<compile_context>
chip_gen: v5e
topology: v5e:2x2
jax: 0.10.0
libtpu: 0.0.40
codegen_flags: <defaults>
</compile_context>

<pallas_src>
import functools

import jax
import jax.numpy as jnp
import numpy as np
from jax import lax
from jax.experimental import pallas as pl
from jax.experimental.pallas import tpu as pltpu

BN_EPS = 1e-5
_F32 = 4  # bytes per element (all math / streaming here is float32)


# ------------------------------ small helpers ------------------------------ #

def _round_up(x, m):
    return ((x + m - 1) // m) * m


def _vmem_capacity_bytes():
    """Physical VMEM per core; conservative 64 MiB (v7x) fallback if unknown."""
    try:
        info = pltpu.get_tpu_info()
        cap = getattr(info, "vmem_capacity_bytes", None)
        if cap:
            return int(cap)
    except Exception:
        pass
    return 64 * 1024 * 1024


def _project(wp, x):
    """(C, C) @ (C, T) projection.

    Small C: unrolled per-input-channel broadcast-FMAs on the VPU (a tiny MXU
    matmul would use only a C-wide sliver and pad the contraction dim).
    Larger C: regular MXU matmul with f32 accumulation.
    """
    c_in = wp.shape[1]
    if c_in <= 16:
        acc = wp[:, 0:1] * x[0:1, :]
        for c in range(1, c_in):
            acc = acc + wp[:, c:c + 1] * x[c:c + 1, :]
        return acc
    return jnp.dot(wp, x, preferred_element_type=jnp.float32)


# --------------------- path A: single-pass resident kernel ----------------- #

def _msf_resident_kernel(y0_ref, y1_ref, y2_ref, w1t_ref, w2t_ref, w3t_ref,
                         wp_ref, bias_ref, o_ref, *, inv_hw):
    """One batch; whole (C, HW) slabs resident in VMEM.

    y*_ref   : (1, C, HW)  channels on sublanes, HW on lanes
    w*t_ref  : (C, C)      SE 1x1 conv weights, TRANSPOSED (in-ch on sublanes)
    wp_ref   : (C, C)      projection weight with BN scale folded in
    bias_ref : (C, 1)      folded BN bias (beta - mean*scale)
    o_ref    : (1, C, HW)
    """
    # Global average pool -> (C, 1).  (Refs are re-read at each use site so the
    # big slab values don't stay live across the whole kernel.)
    g0 = jnp.sum(y0_ref[0], axis=-1, keepdims=True) * inv_hw
    g1 = jnp.sum(y1_ref[0], axis=-1, keepdims=True) * inv_hw
    g2 = jnp.sum(y2_ref[0], axis=-1, keepdims=True) * inv_hw

    # SE 1x1 conv (no bias): s_k[o] = sum_c Wk[o, c] * g_k[c].  With Wk stored
    # transposed (c on sublanes, o on lanes) this is a broadcast-multiply plus a
    # sublane reduction -> (1, C) rows.  No transposes, no 1-lane matmuls.
    s0 = jnp.sum(w1t_ref[...] * g0, axis=0, keepdims=True)
    s1 = jnp.sum(w2t_ref[...] * g1, axis=0, keepdims=True)
    s2 = jnp.sum(w3t_ref[...] * g2, axis=0, keepdims=True)

    # sigmoid, then softmax over the 3 scales (elementwise on (1, C) rows).
    z0 = jax.nn.sigmoid(s0)
    z1 = jax.nn.sigmoid(s1)
    z2 = jax.nn.sigmoid(s2)
    m = jnp.maximum(jnp.maximum(z0, z1), z2)
    e0 = jnp.exp(z0 - m)
    e1 = jnp.exp(z1 - m)
    e2 = jnp.exp(z2 - m)
    inv_sum = 1.0 / (e0 + e1 + e2)
    w0 = e0 * inv_sum            # (1, C)
    w1 = e1 * inv_sum
    w2 = e2 * inv_sum

    # relu(Wp @ (w0*y0 + w1*y1 + w2*y2) + b)
    #   == relu((Wp.*w0) @ y0 + (Wp.*w1) @ y1 + (Wp.*w2) @ y2 + b)
    # (per-channel weights folded into the projection columns -> no x_att temp).
    wp = wp_ref[...]
    proj = _project(wp * w0, y0_ref[0])
    proj = proj + _project(wp * w1, y1_ref[0])
    proj = proj + _project(wp * w2, y2_ref[0])
    o_ref[0] = jnp.maximum(proj + bias_ref[...], 0.0).astype(o_ref.dtype)


# ----------------------- path B: streaming fallback ------------------------ #

def _fuse_project_kernel(y0_ref, y1_ref, y2_ref, w_ref, wp_ref, bias_ref, o_ref):
    """One (batch, HW-tile) step: x_att = sum_k w_k*y_k ; out = relu(Wp@x + b)."""
    w = w_ref[0]                                    # (C, 3)
    x_att = (w[:, 0:1] * y0_ref[0]
             + w[:, 1:2] * y1_ref[0]
             + w[:, 2:3] * y2_ref[0])               # (C, T) f32
    proj = _project(wp_ref[...], x_att)
    o_ref[0] = jnp.maximum(proj + bias_ref[...], 0.0).astype(o_ref.dtype)


def _channel_weights(y0f, y1f, y2f, w_se1, w_se2, w_se3):
    """GAP -> SE 1x1 convs -> sigmoid -> softmax over the 3 scales (JAX).
    Each slab is read exactly once here.  Returns (B, C, 3) float32."""
    g0 = jnp.mean(y0f, axis=-1)                     # (B, C)
    g1 = jnp.mean(y1f, axis=-1)
    g2 = jnp.mean(y2f, axis=-1)
    s = jnp.stack([jnp.dot(g0, w_se1.T),
                   jnp.dot(g1, w_se2.T),
                   jnp.dot(g2, w_se3.T)], axis=-1)  # (B, C, 3)
    return jax.nn.softmax(jax.nn.sigmoid(s), axis=-1).astype(jnp.float32)


# --------------------------------- wrapper --------------------------------- #

def msf_block(y0, y1, y2, params, *, vmem_budget_bytes=None):
    """y0, y1, y2: NCHW float32.  Returns NCHW float32 (eval-mode BN)."""
    B, C, H, W = y0.shape
    HW = H * W

    # NCHW -> (B, C, HW): pure reshape, HW stays on the lane axis.
    y0f = y0.reshape(B, C, HW)
    y1f = y1.reshape(B, C, HW)
    y2f = y2.reshape(B, C, HW)

    # Fold eval-mode BatchNorm into the projection weight / bias.
    scale = params["gamma"] * lax.rsqrt(params["running_var"] + BN_EPS)   # (C,)
    wp_fused = (params["w_proj"] * scale[:, None]).astype(jnp.float32)    # (C, C)
    bias = ((params["beta"] - params["running_mean"] * scale)
            .reshape(C, 1).astype(jnp.float32))

    # Per-generation VMEM budget (v5e/v6e: ~57 MiB of 128; v7x: ~29 of 64).
    cap = _vmem_capacity_bytes()
    budget = int(cap * 0.45) if vmem_budget_bytes is None else int(vmem_budget_bytes)
    vmem_limit = max(32 * 1024 * 1024, int(cap * 0.7))
    cparams = dict(vmem_limit_bytes=vmem_limit)

    # VMEM bookkeeping: sublane-padded C, lane-padded HW, double-buffered
    # weights, and ~3 slabs of f32 temporaries / headroom.
    c_sub = _round_up(C, 8)
    c_lane = _round_up(C, 128)
    hw_lane = _round_up(HW, 128)
    slab = c_sub * hw_lane * _F32
    weight_bytes = 2 * 4 * c_sub * c_lane * _F32 + 2 * c_sub * 128 * _F32
    resident_req = (3 * 2 + 2 + 3) * slab + weight_bytes + (2 << 20)

    if resident_req <= budget:
        # ---- single-pass VMEM-resident path: each slab read exactly once ----
        kernel = functools.partial(_msf_resident_kernel, inv_hw=1.0 / HW)
        y_spec = pl.BlockSpec((1, C, HW), lambda b: (b, 0, 0))
        mat_spec = pl.BlockSpec((C, C), lambda b: (0, 0))
        bias_spec = pl.BlockSpec((C, 1), lambda b: (0, 0))
        out_flat = pl.pallas_call(
            kernel,
            out_shape=jax.ShapeDtypeStruct((B, C, HW), y0.dtype),
            grid=(B,),
            in_specs=[y_spec, y_spec, y_spec,
                      mat_spec, mat_spec, mat_spec, mat_spec, bias_spec],
            out_specs=y_spec,
            compiler_params=pltpu.CompilerParams(
                dimension_semantics=("parallel",), **cparams),
        )(y0f, y1f, y2f,
          params["w_se1"].T.astype(jnp.float32),
          params["w_se2"].T.astype(jnp.float32),
          params["w_se3"].T.astype(jnp.float32),
          wp_fused, bias)
        return out_flat.reshape(B, C, H, W)

    # ---- streaming fallback: JAX prologue for the (B, C, 3) fusion weights ---
    w = _channel_weights(y0f, y1f, y2f,
                         params["w_se1"], params["w_se2"], params["w_se3"])

    # HW (lane) tile as large as the VMEM budget allows (multiple of 128).
    per_lane_bytes = (3 * 2 + 2 + 3) * c_sub * _F32
    avail = budget - weight_bytes - 2 * c_sub * 128 * _F32 - (2 << 20)
    t = max(128, (avail // per_lane_bytes // 128) * 128)
    t = min(t, 32768)                      # vreg-pressure sanity cap
    T = HW if (HW <= 128 or t >= HW) else int(t)
    n_t = pl.cdiv(HW, T)

    y_spec = pl.BlockSpec((1, C, T), lambda b, i: (b, 0, i))
    w_spec = pl.BlockSpec((1, C, 3), lambda b, i: (b, 0, 0))
    wp_spec = pl.BlockSpec((C, C), lambda b, i: (0, 0))
    bias_spec = pl.BlockSpec((C, 1), lambda b, i: (0, 0))

    out_flat = pl.pallas_call(
        _fuse_project_kernel,
        out_shape=jax.ShapeDtypeStruct((B, C, HW), y0.dtype),
        grid=(B, n_t),
        in_specs=[y_spec, y_spec, y_spec, w_spec, wp_spec, bias_spec],
        out_specs=y_spec,
        compiler_params=pltpu.CompilerParams(
            dimension_semantics=("parallel", "parallel"), **cparams),
    )(y0f, y1f, y2f, w, wp_fused, bias)
    return out_flat.reshape(B, C, H, W)


# -------------------------------- reference -------------------------------- #

def msf_ref(y0, y1, y2, p):
    """Pure-JAX reference mirroring the PyTorch forward (BN in eval mode)."""
    def gap_se(y, w):
        g = jnp.mean(y, axis=(2, 3))                 # (B, C)
        return jnp.einsum("oc,bc->bo", w, g)         # 1x1 conv, no bias
    s = jnp.stack([gap_se(y0, p["w_se1"]),
                   gap_se(y1, p["w_se2"]),
                   gap_se(y2, p["w_se3"])], axis=2)  # (B, C, 3)
    w = jax.nn.softmax(jax.nn.sigmoid(s), axis=2)
    w0 = w[:, :, 0][:, :, None, None]
    w1 = w[:, :, 1][:, :, None, None]
    w2 = w[:, :, 2][:, :, None, None]
    x_att = w0 * y0 + w1 * y1 + w2 * y2
    proj = jnp.einsum("oc,bchw->bohw", p["w_proj"], x_att)
    g = p["gamma"].reshape(1, -1, 1, 1)
    b = p["beta"].reshape(1, -1, 1, 1)
    m = p["running_mean"].reshape(1, -1, 1, 1)
    v = p["running_var"].reshape(1, -1, 1, 1)
    bn = (proj - m) * lax.rsqrt(v + BN_EPS) * g + b
    return jnp.maximum(bn, 0.0)


if __name__ == "__main__":
    B, C, H, W = 2, 4, 16, 16
    key = jax.random.PRNGKey(0)
    k0, k1, k2, k3, k4, k5, k6 = jax.random.split(key, 7)

    y0 = jax.random.normal(k0, (B, C, H, W), jnp.float32)
    y1 = jax.random.normal(k1, (B, C, H, W), jnp.float32)
    y2 = jax.random.normal(k2, (B, C, H, W), jnp.float32)

    # Conv2d 1x1 weights squeezed to (Cout, Cin).  BatchNorm uses PyTorch
    # default init (gamma=1, beta=0, mean=0, var=1), evaluated in eval mode.
    params = {
        "w_se1": 0.3 * jax.random.normal(k3, (C, C), jnp.float32),
        "w_se2": 0.3 * jax.random.normal(k4, (C, C), jnp.float32),
        "w_se3": 0.3 * jax.random.normal(k5, (C, C), jnp.float32),
        "w_proj": 0.3 * jax.random.normal(k6, (C, C), jnp.float32),
        "gamma": jnp.ones((C,), jnp.float32),
        "beta": jnp.zeros((C,), jnp.float32),
        "running_mean": jnp.zeros((C,), jnp.float32),
        "running_var": jnp.ones((C,), jnp.float32),
    }

    ref = msf_ref(y0, y1, y2, params)

    # Single-pass VMEM-resident path (selected automatically at this shape).
    out = msf_block(y0, y1, y2, params)
    jax.block_until_ready(out)
    np.testing.assert_allclose(np.asarray(out), np.asarray(ref),
                               rtol=1e-4, atol=1e-5)

    # Streaming fallback path, forced by a tiny budget (coverage of the
    # large-HW code path: grid=(B, 2), T=128).
    out_stream = msf_block(y0, y1, y2, params, vmem_budget_bytes=64 * 1024)
    jax.block_until_ready(out_stream)
    np.testing.assert_allclose(np.asarray(out_stream), np.asarray(ref),
                               rtol=1e-4, atol=1e-5)

    print("KERNEL_OK")
</pallas_src>

<mosaic_0001>
module attributes {stable_mosaic.version = 11 : i64} {
  func.func @_msf_resident_kernel(%arg0: i32, %arg1: memref<1x4x256xf32, #tpu.memory_space<vmem>>, %arg2: memref<1x4x256xf32, #tpu.memory_space<vmem>>, %arg3: memref<1x4x256xf32, #tpu.memory_space<vmem>>, %arg4: memref<4x4xf32, #tpu.memory_space<vmem>>, %arg5: memref<4x4xf32, #tpu.memory_space<vmem>>, %arg6: memref<4x4xf32, #tpu.memory_space<vmem>>, %arg7: memref<4x4xf32, #tpu.memory_space<vmem>>, %arg8: memref<4x1xf32, #tpu.memory_space<vmem>>, %arg9: memref<1x4x256xf32, #tpu.memory_space<vmem>>) attributes {dimension_semantics = [#tpu.dimension_semantics<parallel>], iteration_bounds = array<i64: 2>, scalar_prefetch = 0 : i64, scratch_operands = 0 : i64, tpu.core_type = #tpu.core_type<tc>, window_params = [{transform_indices = @transform_0, window_bounds = array<i64: 1, 4, 256>}, {transform_indices = @transform_1, window_bounds = array<i64: 1, 4, 256>}, {transform_indices = @transform_2, window_bounds = array<i64: 1, 4, 256>}, {pipeline_mode = #tpu.pipeline_mode<synchronous>, transform_indices = @transform_3, window_bounds = array<i64: 4, 4>}, {pipeline_mode = #tpu.pipeline_mode<synchronous>, transform_indices = @transform_4, window_bounds = array<i64: 4, 4>}, {pipeline_mode = #tpu.pipeline_mode<synchronous>, transform_indices = @transform_5, window_bounds = array<i64: 4, 4>}, {pipeline_mode = #tpu.pipeline_mode<synchronous>, transform_indices = @transform_6, window_bounds = array<i64: 4, 4>}, {pipeline_mode = #tpu.pipeline_mode<synchronous>, transform_indices = @transform_7, window_bounds = array<i64: 4, 1>}, {transform_indices = @transform_8, window_bounds = array<i64: 1, 4, 256>}]} {
    %c0 = arith.constant 0 : index
    %c0_0 = arith.constant 0 : index
    %c0_1 = arith.constant 0 : index
    %0 = vector.load %arg1[%c0, %c0_0, %c0_1] : memref<1x4x256xf32, #tpu.memory_space<vmem>>, vector<1x4x256xf32>
    %1 = vector.shape_cast %0 : vector<1x4x256xf32> to vector<4x256xf32>
    %cst = arith.constant dense<0.000000e+00> : vector<4xf32>
    %2 = vector.multi_reduction <add>, %1, %cst [1] : vector<4x256xf32> to vector<4xf32>
    %3 = vector.shape_cast %2 : vector<4xf32> to vector<4x1xf32>
    %cst_2 = arith.constant 3.906250e-03 : f32
    %4 = vector.broadcast %cst_2 : f32 to vector<4x1xf32>
    %5 = arith.mulf %3, %4 : vector<4x1xf32>
    %c0_3 = arith.constant 0 : index
    %c0_4 = arith.constant 0 : index
    %c0_5 = arith.constant 0 : index
    %6 = vector.load %arg2[%c0_3, %c0_4, %c0_5] : memref<1x4x256xf32, #tpu.memory_space<vmem>>, vector<1x4x256xf32>
    %7 = vector.shape_cast %6 : vector<1x4x256xf32> to vector<4x256xf32>
    %cst_6 = arith.constant dense<0.000000e+00> : vector<4xf32>
    %8 = vector.multi_reduction <add>, %7, %cst_6 [1] : vector<4x256xf32> to vector<4xf32>
    %9 = vector.shape_cast %8 : vector<4xf32> to vector<4x1xf32>
    %cst_7 = arith.constant 3.906250e-03 : f32
    %10 = vector.broadcast %cst_7 : f32 to vector<4x1xf32>
    %11 = arith.mulf %9, %10 : vector<4x1xf32>
    %c0_8 = arith.constant 0 : index
    %c0_9 = arith.constant 0 : index
    %c0_10 = arith.constant 0 : index
    %12 = vector.load %arg3[%c0_8, %c0_9, %c0_10] : memref<1x4x256xf32, #tpu.memory_space<vmem>>, vector<1x4x256xf32>
    %13 = vector.shape_cast %12 : vector<1x4x256xf32> to vector<4x256xf32>
    %cst_11 = arith.constant dense<0.000000e+00> : vector<4xf32>
    %14 = vector.multi_reduction <add>, %13, %cst_11 [1] : vector<4x256xf32> to vector<4xf32>
    %15 = vector.shape_cast %14 : vector<4xf32> to vector<4x1xf32>
    %cst_12 = arith.constant 3.906250e-03 : f32
    %16 = vector.broadcast %cst_12 : f32 to vector<4x1xf32>
    %17 = arith.mulf %15, %16 : vector<4x1xf32>
    %c0_13 = arith.constant 0 : index
    %c0_14 = arith.constant 0 : index
    %18 = vector.load %arg4[%c0_13, %c0_14] : memref<4x4xf32, #tpu.memory_space<vmem>>, vector<4x4xf32>
    %19 = vector.broadcast %5 : vector<4x1xf32> to vector<4x4xf32>
    %20 = arith.mulf %18, %19 : vector<4x4xf32>
    %cst_15 = arith.constant dense<0.000000e+00> : vector<4xf32>
    %21 = vector.multi_reduction <add>, %20, %cst_15 [0] : vector<4x4xf32> to vector<4xf32>
    %22 = vector.shape_cast %21 : vector<4xf32> to vector<1x4xf32>
    %c0_16 = arith.constant 0 : index
    %c0_17 = arith.constant 0 : index
    %23 = vector.load %arg5[%c0_16, %c0_17] : memref<4x4xf32, #tpu.memory_space<vmem>>, vector<4x4xf32>
    %24 = vector.broadcast %11 : vector<4x1xf32> to vector<4x4xf32>
    %25 = arith.mulf %23, %24 : vector<4x4xf32>
    %cst_18 = arith.constant dense<0.000000e+00> : vector<4xf32>
    %26 = vector.multi_reduction <add>, %25, %cst_18 [0] : vector<4x4xf32> to vector<4xf32>
    %27 = vector.shape_cast %26 : vector<4xf32> to vector<1x4xf32>
    %c0_19 = arith.constant 0 : index
    %c0_20 = arith.constant 0 : index
    %28 = vector.load %arg6[%c0_19, %c0_20] : memref<4x4xf32, #tpu.memory_space<vmem>>, vector<4x4xf32>
    %29 = vector.broadcast %17 : vector<4x1xf32> to vector<4x4xf32>
    %30 = arith.mulf %28, %29 : vector<4x4xf32>
    %cst_21 = arith.constant dense<0.000000e+00> : vector<4xf32>
    %31 = vector.multi_reduction <add>, %30, %cst_21 [0] : vector<4x4xf32> to vector<4xf32>
    %32 = vector.shape_cast %31 : vector<4xf32> to vector<1x4xf32>
    %33 = arith.negf %22 : vector<1x4xf32>
    %34 = math.exp %33 : vector<1x4xf32>
    %cst_22 = arith.constant 1.000000e+00 : f32
    %35 = vector.broadcast %cst_22 : f32 to vector<1x4xf32>
    %36 = arith.addf %35, %34 : vector<1x4xf32>
    %37 = arith.divf %35, %36 : vector<1x4xf32>
    %38 = arith.negf %27 : vector<1x4xf32>
    %39 = math.exp %38 : vector<1x4xf32>
    %cst_23 = arith.constant 1.000000e+00 : f32
    %40 = vector.broadcast %cst_23 : f32 to vector<1x4xf32>
    %41 = arith.addf %40, %39 : vector<1x4xf32>
    %42 = arith.divf %40, %41 : vector<1x4xf32>
    %43 = arith.negf %32 : vector<1x4xf32>
    %44 = math.exp %43 : vector<1x4xf32>
    %cst_24 = arith.constant 1.000000e+00 : f32
    %45 = vector.broadcast %cst_24 : f32 to vector<1x4xf32>
    %46 = arith.addf %45, %44 : vector<1x4xf32>
    %47 = arith.divf %45, %46 : vector<1x4xf32>
    %48 = arith.maximumf %37, %42 : vector<1x4xf32>
    %49 = arith.maximumf %48, %47 : vector<1x4xf32>
    %50 = arith.subf %37, %49 : vector<1x4xf32>
    %51 = math.exp %50 : vector<1x4xf32>
    %52 = arith.subf %42, %49 : vector<1x4xf32>
    %53 = math.exp %52 : vector<1x4xf32>
    %54 = arith.subf %47, %49 : vector<1x4xf32>
    %55 = math.exp %54 : vector<1x4xf32>
    %56 = arith.addf %51, %53 : vector<1x4xf32>
    %57 = arith.addf %56, %55 : vector<1x4xf32>
    %cst_25 = arith.constant 1.000000e+00 : f32
    %58 = vector.broadcast %cst_25 : f32 to vector<1x4xf32>
    %59 = arith.divf %58, %57 : vector<1x4xf32>
    %60 = arith.mulf %51, %59 : vector<1x4xf32>
    %61 = arith.mulf %53, %59 : vector<1x4xf32>
    %62 = arith.mulf %55, %59 : vector<1x4xf32>
    %c0_26 = arith.constant 0 : index
    %c0_27 = arith.constant 0 : index
    %63 = vector.load %arg7[%c0_26, %c0_27] : memref<4x4xf32, #tpu.memory_space<vmem>>, vector<4x4xf32>
    %64 = vector.broadcast %60 : vector<1x4xf32> to vector<4x4xf32>
    %65 = arith.mulf %63, %64 : vector<4x4xf32>
    %c0_28 = arith.constant 0 : index
    %c0_29 = arith.constant 0 : index
    %c0_30 = arith.constant 0 : index
    %66 = vector.load %arg1[%c0_28, %c0_29, %c0_30] : memref<1x4x256xf32, #tpu.memory_space<vmem>>, vector<1x4x256xf32>
    %67 = vector.shape_cast %66 : vector<1x4x256xf32> to vector<4x256xf32>
    %68 = vector.extract_strided_slice %65 {offsets = [0, 0], sizes = [4, 1], strides = [1, 1]} : vector<4x4xf32> to vector<4x1xf32>
    %69 = vector.extract_strided_slice %67 {offsets = [0, 0], sizes = [1, 256], strides = [1, 1]} : vector<4x256xf32> to vector<1x256xf32>
    %70 = vector.broadcast %68 : vector<4x1xf32> to vector<4x256xf32>
    %71 = vector.broadcast %69 : vector<1x256xf32> to vector<4x256xf32>
    %72 = arith.mulf %70, %71 : vector<4x256xf32>
    %73 = vector.extract_strided_slice %65 {offsets = [0, 1], sizes = [4, 1], strides = [1, 1]} : vector<4x4xf32> to vector<4x1xf32>
    %74 = vector.extract_strided_slice %67 {offsets = [1, 0], sizes = [1, 256], strides = [1, 1]} : vector<4x256xf32> to vector<1x256xf32>
    %75 = vector.broadcast %73 : vector<4x1xf32> to vector<4x256xf32>
    %76 = vector.broadcast %74 : vector<1x256xf32> to vector<4x256xf32>
    %77 = arith.mulf %75, %76 : vector<4x256xf32>
    %78 = arith.addf %72, %77 : vector<4x256xf32>
    %79 = vector.extract_strided_slice %65 {offsets = [0, 2], sizes = [4, 1], strides = [1, 1]} : vector<4x4xf32> to vector<4x1xf32>
    %80 = vector.extract_strided_slice %67 {offsets = [2, 0], sizes = [1, 256], strides = [1, 1]} : vector<4x256xf32> to vector<1x256xf32>
    %81 = vector.broadcast %79 : vector<4x1xf32> to vector<4x256xf32>
    %82 = vector.broadcast %80 : vector<1x256xf32> to vector<4x256xf32>
    %83 = arith.mulf %81, %82 : vector<4x256xf32>
    %84 = arith.addf %78, %83 : vector<4x256xf32>
    %85 = vector.extract_strided_slice %65 {offsets = [0, 3], sizes = [4, 1], strides = [1, 1]} : vector<4x4xf32> to vector<4x1xf32>
    %86 = vector.extract_strided_slice %67 {offsets = [3, 0], sizes = [1, 256], strides = [1, 1]} : vector<4x256xf32> to vector<1x256xf32>
    %87 = vector.broadcast %85 : vector<4x1xf32> to vector<4x256xf32>
    %88 = vector.broadcast %86 : vector<1x256xf32> to vector<4x256xf32>
    %89 = arith.mulf %87, %88 : vector<4x256xf32>
    %90 = arith.addf %84, %89 : vector<4x256xf32>
    %91 = vector.broadcast %61 : vector<1x4xf32> to vector<4x4xf32>
    %92 = arith.mulf %63, %91 : vector<4x4xf32>
    %c0_31 = arith.constant 0 : index
    %c0_32 = arith.constant 0 : index
    %c0_33 = arith.constant 0 : index
    %93 = vector.load %arg2[%c0_31, %c0_32, %c0_33] : memref<1x4x256xf32, #tpu.memory_space<vmem>>, vector<1x4x256xf32>
    %94 = vector.shape_cast %93 : vector<1x4x256xf32> to vector<4x256xf32>
    %95 = vector.extract_strided_slice %92 {offsets = [0, 0], sizes = [4, 1], strides = [1, 1]} : vector<4x4xf32> to vector<4x1xf32>
    %96 = vector.extract_strided_slice %94 {offsets = [0, 0], sizes = [1, 256], strides = [1, 1]} : vector<4x256xf32> to vector<1x256xf32>
    %97 = vector.broadcast %95 : vector<4x1xf32> to vector<4x256xf32>
    %98 = vector.broadcast %96 : vector<1x256xf32> to vector<4x256xf32>
    %99 = arith.mulf %97, %98 : vector<4x256xf32>
    %100 = vector.extract_strided_slice %92 {offsets = [0, 1], sizes = [4, 1], strides = [1, 1]} : vector<4x4xf32> to vector<4x1xf32>
    %101 = vector.extract_strided_slice %94 {offsets = [1, 0], sizes = [1, 256], strides = [1, 1]} : vector<4x256xf32> to vector<1x256xf32>
    %102 = vector.broadcast %100 : vector<4x1xf32> to vector<4x256xf32>
    %103 = vector.broadcast %101 : vector<1x256xf32> to vector<4x256xf32>
    %104 = arith.mulf %102, %103 : vector<4x256xf32>
    %105 = arith.addf %99, %104 : vector<4x256xf32>
    %106 = vector.extract_strided_slice %92 {offsets = [0, 2], sizes = [4, 1], strides = [1, 1]} : vector<4x4xf32> to vector<4x1xf32>
    %107 = vector.extract_strided_slice %94 {offsets = [2, 0], sizes = [1, 256], strides = [1, 1]} : vector<4x256xf32> to vector<1x256xf32>
    %108 = vector.broadcast %106 : vector<4x1xf32> to vector<4x256xf32>
    %109 = vector.broadcast %107 : vector<1x256xf32> to vector<4x256xf32>
    %110 = arith.mulf %108, %109 : vector<4x256xf32>
    %111 = arith.addf %105, %110 : vector<4x256xf32>
    %112 = vector.extract_strided_slice %92 {offsets = [0, 3], sizes = [4, 1], strides = [1, 1]} : vector<4x4xf32> to vector<4x1xf32>
    %113 = vector.extract_strided_slice %94 {offsets = [3, 0], sizes = [1, 256], strides = [1, 1]} : vector<4x256xf32> to vector<1x256xf32>
    %114 = vector.broadcast %112 : vector<4x1xf32> to vector<4x256xf32>
    %115 = vector.broadcast %113 : vector<1x256xf32> to vector<4x256xf32>
    %116 = arith.mulf %114, %115 : vector<4x256xf32>
    %117 = arith.addf %111, %116 : vector<4x256xf32>
    %118 = arith.addf %90, %117 : vector<4x256xf32>
    %119 = vector.broadcast %62 : vector<1x4xf32> to vector<4x4xf32>
    %120 = arith.mulf %63, %119 : vector<4x4xf32>
    %c0_34 = arith.constant 0 : index
    %c0_35 = arith.constant 0 : index
    %c0_36 = arith.constant 0 : index
    %121 = vector.load %arg3[%c0_34, %c0_35, %c0_36] : memref<1x4x256xf32, #tpu.memory_space<vmem>>, vector<1x4x256xf32>
    %122 = vector.shape_cast %121 : vector<1x4x256xf32> to vector<4x256xf32>
    %123 = vector.extract_strided_slice %120 {offsets = [0, 0], sizes = [4, 1], strides = [1, 1]} : vector<4x4xf32> to vector<4x1xf32>
    %124 = vector.extract_strided_slice %122 {offsets = [0, 0], sizes = [1, 256], strides = [1, 1]} : vector<4x256xf32> to vector<1x256xf32>
    %125 = vector.broadcast %123 : vector<4x1xf32> to vector<4x256xf32>
    %126 = vector.broadcast %124 : vector<1x256xf32> to vector<4x256xf32>
    %127 = arith.mulf %125, %126 : vector<4x256xf32>
    %128 = vector.extract_strided_slice %120 {offsets = [0, 1], sizes = [4, 1], strides = [1, 1]} : vector<4x4xf32> to vector<4x1xf32>
    %129 = vector.extract_strided_slice %122 {offsets = [1, 0], sizes = [1, 256], strides = [1, 1]} : vector<4x256xf32> to vector<1x256xf32>
    %130 = vector.broadcast %128 : vector<4x1xf32> to vector<4x256xf32>
    %131 = vector.broadcast %129 : vector<1x256xf32> to vector<4x256xf32>
    %132 = arith.mulf %130, %131 : vector<4x256xf32>
    %133 = arith.addf %127, %132 : vector<4x256xf32>
    %134 = vector.extract_strided_slice %120 {offsets = [0, 2], sizes = [4, 1], strides = [1, 1]} : vector<4x4xf32> to vector<4x1xf32>
    %135 = vector.extract_strided_slice %122 {offsets = [2, 0], sizes = [1, 256], strides = [1, 1]} : vector<4x256xf32> to vector<1x256xf32>
    %136 = vector.broadcast %134 : vector<4x1xf32> to vector<4x256xf32>
    %137 = vector.broadcast %135 : vector<1x256xf32> to vector<4x256xf32>
    %138 = arith.mulf %136, %137 : vector<4x256xf32>
    %139 = arith.addf %133, %138 : vector<4x256xf32>
    %140 = vector.extract_strided_slice %120 {offsets = [0, 3], sizes = [4, 1], strides = [1, 1]} : vector<4x4xf32> to vector<4x1xf32>
    %141 = vector.extract_strided_slice %122 {offsets = [3, 0], sizes = [1, 256], strides = [1, 1]} : vector<4x256xf32> to vector<1x256xf32>
    %142 = vector.broadcast %140 : vector<4x1xf32> to vector<4x256xf32>
    %143 = vector.broadcast %141 : vector<1x256xf32> to vector<4x256xf32>
    %144 = arith.mulf %142, %143 : vector<4x256xf32>
    %145 = arith.addf %139, %144 : vector<4x256xf32>
    %146 = arith.addf %118, %145 : vector<4x256xf32>
    %c0_37 = arith.constant 0 : index
    %c0_38 = arith.constant 0 : index
    %147 = vector.load %arg8[%c0_37, %c0_38] : memref<4x1xf32, #tpu.memory_space<vmem>>, vector<4x1xf32>
    %148 = vector.broadcast %147 : vector<4x1xf32> to vector<4x256xf32>
    %149 = arith.addf %146, %148 : vector<4x256xf32>
    %cst_39 = arith.constant 0.000000e+00 : f32
    %150 = vector.broadcast %cst_39 : f32 to vector<4x256xf32>
    %151 = arith.maximumf %149, %150 : vector<4x256xf32>
    %c0_40 = arith.constant 0 : index
    %c0_41 = arith.constant 0 : index
    %c0_42 = arith.constant 0 : index
    %152 = vector.load %arg9[%c0_40, %c0_41, %c0_42] : memref<1x4x256xf32, #tpu.memory_space<vmem>>, vector<1x4x256xf32>
    %153 = vector.shape_cast %152 : vector<1x4x256xf32> to vector<4x256xf32>
    %154 = vector.shape_cast %151 : vector<4x256xf32> to vector<1x4x256xf32>
    tpu.vector_store %arg9[%c0_40, %c0_41, %c0_42], %154 {strides = array<i32>} : memref<1x4x256xf32, #tpu.memory_space<vmem>>, vector<1x4x256xf32>,
    return
  }
  func.func @transform_0(%arg0: i32) -> (i32, i32, i32) {
    %c0_i32 = arith.constant 0 : i32
    %c0_i32_0 = arith.constant 0 : i32
    %c0_i32_1 = arith.constant 0 : i32
    return %arg0, %c0_i32, %c0_i32_0 : i32, i32, i32
  }
  func.func @transform_1(%arg0: i32) -> (i32, i32, i32) {
    %c0_i32 = arith.constant 0 : i32
    %c0_i32_0 = arith.constant 0 : i32
    %c0_i32_1 = arith.constant 0 : i32
    return %arg0, %c0_i32, %c0_i32_0 : i32, i32, i32
  }
  func.func @transform_2(%arg0: i32) -> (i32, i32, i32) {
    %c0_i32 = arith.constant 0 : i32
    %c0_i32_0 = arith.constant 0 : i32
    %c0_i32_1 = arith.constant 0 : i32
    return %arg0, %c0_i32, %c0_i32_0 : i32, i32, i32
  }
  func.func @transform_3(%arg0: i32) -> (i32, i32) {
    %c0_i32 = arith.constant 0 : i32
    %c0_i32_0 = arith.constant 0 : i32
    %c0_i32_1 = arith.constant 0 : i32
    return %c0_i32, %c0_i32_0 : i32, i32
  }
  func.func @transform_4(%arg0: i32) -> (i32, i32) {
    %c0_i32 = arith.constant 0 : i32
    %c0_i32_0 = arith.constant 0 : i32
    %c0_i32_1 = arith.constant 0 : i32
    return %c0_i32, %c0_i32_0 : i32, i32
  }
  func.func @transform_5(%arg0: i32) -> (i32, i32) {
    %c0_i32 = arith.constant 0 : i32
    %c0_i32_0 = arith.constant 0 : i32
    %c0_i32_1 = arith.constant 0 : i32
    return %c0_i32, %c0_i32_0 : i32, i32
  }
  func.func @transform_6(%arg0: i32) -> (i32, i32) {
    %c0_i32 = arith.constant 0 : i32
    %c0_i32_0 = arith.constant 0 : i32
    %c0_i32_1 = arith.constant 0 : i32
    return %c0_i32, %c0_i32_0 : i32, i32
  }
  func.func @transform_7(%arg0: i32) -> (i32, i32) {
    %c0_i32 = arith.constant 0 : i32
    %c0_i32_0 = arith.constant 0 : i32
    %c0_i32_1 = arith.constant 0 : i32
    return %c0_i32, %c0_i32_0 : i32, i32
  }
  func.func @transform_8(%arg0: i32) -> (i32, i32, i32) {
    %c0_i32 = arith.constant 0 : i32
    %c0_i32_0 = arith.constant 0 : i32
    %c0_i32_1 = arith.constant 0 : i32
    return %arg0, %c0_i32, %c0_i32_0 : i32, i32, i32
  }
}

</mosaic_0001>

<bundles_post_ra>
// kernel: tpu_custom_call.1
= control target key start
LH: loop header
LB: loop body
LE: loop exit
PB: predicated region body
PF: predicated region fallthrough
CT: control target
= control target key end

     0   :  { %s1624_s0 = inlined_call_operand.hbm [shape: f32[2,4,256], index: 0, kind: input, shape index: {}]   ;;  %s1625_s1 = inlined_call_operand.hbm [shape: f32[2,4,256], index: 1, kind: input, shape index: {}]   ;;  %s1626_s2 = inlined_call_operand.hbm [shape: f32[2,4,256], index: 2, kind: input, shape index: {}]   ;;  %s1627_s3 = inlined_call_operand.vmem [shape: f32[4,4], index: 3, kind: input, shape index: {}]   ;;  %s1628_s4 = inlined_call_operand.hbm [shape: f32[4,4], index: 4, kind: input, shape index: {}]   ;;  %s1629_s5 = inlined_call_operand.hbm [shape: f32[4,4], index: 5, kind: input, shape index: {}]   ;;  %s1630_s6 = inlined_call_operand.vmem [shape: f32[4,4], index: 6, kind: input, shape index: {}]   ;;  %s1631_s7 = inlined_call_operand.vmem [shape: f32[4,1], index: 7, kind: input, shape index: {}]   ;;  %s1632_s8 = inlined_call_operand.hbm [shape: f32[2,4,256], index: 8, kind: output, shape index: {}]  }
   0x1   :  { %1642 = sst [smem:[#allocation22_spill]] %s1625_s1 }
   0x2   :  { %1643 = sst [smem:[#allocation23_spill]] %s1628_s4 }
   0x3   :  { %13 = vsyncpa [#allocation3], 0 }
   0x4   :  { %15 = vsyncpa [#allocation3 + $0x1], 0 }
   0x5   :  { %16 = vsyncpa [#allocation6], 0 }
   0x6   :  { %18 = vsyncpa [#allocation6 + $0x1], 0 }
   0x7   :  { %19 = vsyncpa [#allocation9], 0 }
   0x8   :  { %20 = vsyncpa [#allocation4], 0 }
   0x9   :  { %22 = vsyncpa [#allocation4 + $0x1], 0  ;;  %s1346_s27 = smov 0   ;;  %s1348_s28 = smov 0  }
   0xa   :  { %s1350_s29 = smov 0   ;;  %s1352_s30 = smov 0  }
   0xb LB: > { %1644 = sst [smem:[#allocation16_spill]] %s1281_s27  ;;  %s1367_s9 = sadd.s32 4294967295, %s1293_s30   ;;  %s1293_s30 = sphi %s1352_s30, %s1666_s30   ;;  %s1289_s29 = sphi %s1350_s29, %s1670_s29   ;;  %s1285_s28 = sphi %s1348_s28, %s1669_s28   ;;  %s1281_s27 = sphi %s1346_s27, %s1668_s27  }
   0xc   : > { %1645 = sst [smem:[#allocation17_spill]] %s1293_s30  ;;  %s924_s10 = sadd.s32 4294967294, %s1293_s30  }
   0xd   : > { %p48_p0 = scmp.ne.s32.totalorder %s1285_s28, %s1281_s27  ;;  %p1641_p1 = scmp.eq.s32.totalorder %s1367_s9, 0 }
   0xe   : > { %p229_p2 = scmp.eq.s32.totalorder %s1367_s9, 1  ;;  %p235_p3 = scmp.eq.s32.totalorder %s924_s10, 1 }
   0xf   : > { %p1376_p4 = por %p1641_p1, %p48_p0  ;;  %p925_p5 = scmp.ge.s32.totalorder %s1293_s30, 1 }
  0x10   : > { %p1381_p6 = por %p235_p3, %p48_p0  ;;  %p242_p7 = scmp.lt.s32.totalorder %s1293_s30, 3 }
  0x11   : > { %s1649_s4 = sld [smem:[#allocation23_spill]]  ;;  %s1295_s17 = smov [#allocation8]  }
  0x12   : > { %s1647_s12 = scalar_select %p1381_p6, 1, 0 }
  0x13   : > { %p1389_p8 = pnand %p925_p5, %p242_p7  ;;  %s259_s18 = sshll.u32 %s1295_s17, 4  ;;  %s260_s18 = int_to_ptr.vmem [resolvable:$true] %s259_s18 }
  0x14   : > { %1648 = sst [smem:[#allocation18_spill]] %s1647_s12  ;;  %s1403_s20 = sadd.s32 1, %s1293_s30  }
  0x15   : > { %p973_p10 = pneg %p1389_p8  ;;  %1652 = sst [smem:[#allocation19_spill]] %s1403_s20 }
  0x16   : > { %s35_s21 = sadd.s32 1, %s1289_s29  ;;  %s32_s22 = ssub.s32 %s1293_s30, %s1403_s20 }
  0x17   : > { %s257_s15 = sshll.u32 %s1649_s4, 4  ;;  %p1398_p11 = pnand %p973_p10, %p1641_p1  ;;  %s258_s15 = int_to_ptr.hbm [resolvable:$true] %s257_s15 }
  0x18   : > { %p33_p12 = scmp.eq.s32.totalorder %s32_s22, 0  ;;  %p42_p13 = scmp.ne.s32.totalorder %s1289_s29, %s1285_s28 }
  0x19   : > { %976 = dma.hbm_to_vmem [thread:$0]  (!%p1398_p11), %s258_s15, 64, %s260_s18, [#allocation9]  }
  0x1a   : > { %p43_p0 = scmp.eq.s32.totalorder %s1293_s30, 0  ;;  %p996_p3 = scmp.lt.s32.totalorder %s1293_s30, 2 }
  0x1b   : > { %s1415_s23 = scalar_select %p33_p12, %s1289_s29, %s35_s21  }
  0x1c   : > { %p44_p5 = por %p43_p0, %p42_p13  ;;  %p1419_p7 = por %p229_p2, %p42_p13 }
  0x1d   : > { %1653 = sst [smem:[#allocation20_spill]] %s1415_s23  ;;  %s1633_s25 = sand.u32 1, %s1289_s29  }
  0x1e   : > { %s1654_s24 = scalar_select %p1419_p7, 1, 0 }
  0x1f   : > { %s1425_s26 = sshll.u32 %s1293_s30, 3  ;;  %s1429_s10 = sshll.u32 %s1633_s25, 3 }
  0x20   : > { %1655 = sst [smem:[#allocation21_spill]] %s1654_s24  ;;  %p1431_p10 = pnand %p996_p3, %p44_p5 }
  0x21   : > { %s308_s14 = sand.u32 1, %s1293_s30   ;;  %s1657_s1 = sld [smem:[#allocation22_spill]] }
  0x22   : > { %s312_s21 = scalar_lea.vmem [#allocation5], %s1429_s10  ;;  %s269_s20 = sshll.u32 %s1629_s5, 4  ;;  %s270_s20 = int_to_ptr.hbm [resolvable:$true] %s269_s20 }
  0x23   : > { %s321_s22 = sshll.u32 %s312_s21, 4  ;;  %s1444_s12 = scalar_lea.sflag [#allocation6], %s308_s14  ;;  %s322_s22 = int_to_ptr.vmem [resolvable:$true] %s321_s22 }
  0x24   : > { %p1103_p12 = pneg %p1431_p10 }
  0x27   : > { %s317_s18 = scalar_lea.hbm %s1657_s1, %s1425_s26 }
  0x28   : > { %s319_s4 = sshll.u32 %s317_s18, 4  ;;  %s1106_s18 = scalar_lea.hbm %s1657_s1, 16  ;;  %s320_s4 = int_to_ptr.hbm [resolvable:$true] %s319_s4 }
  0x29   : > { %s1099_s27 = sshra.s32 %s320_s4, 4  ;;  %s1100_s27 = int_to_ptr.hbm [resolvable:$true] %s1099_s27 }
  0x2a   : > { %s1101_s24 = scalar_lea.hbm %s1100_s27, 8  ;;  %p1107_p3 = scmp.lt.s32.totalorder %s1100_s27, %s1657_s1 }
  0x2b   : > { %p1102_p2 = scmp.ne.s32.totalorder %s1100_s27, %s1101_s24  ;;  %p1108_p5 = scmp.lt.s32.totalorder %s1106_s18, %s1101_s24 }
  0x2d   : > { %p1104_p13 = pnand %p1103_p12, %p1102_p2  ;;  %p1109_p9 = por %p1108_p5, %p1107_p3 }
  0x2f   : > { %p1105_p0 = pneg %p1104_p13 }
  0x31   : > { %p1110_p1 = pnand %p1109_p9, %p1105_p0 }
  0x33   : > { %1113 = shalt.err (!%p1110_p1)
}
  0x34   : > { %986 = dma.hbm_to_vmem [thread:$0]  (!%p1431_p10), %s320_s4, 128, %s322_s22, %s1444_s12  }
  0x35   : > { %s1296_s23 = smov [#allocation10]   ;;  %s297_s24 = scalar_lea.hbm %s1624_s0, %s1425_s26 }
  0x36   : > { %s271_s25 = sshll.u32 %s1296_s23, 4  ;;  %s292_s14 = scalar_lea.vmem [#allocation2], %s1429_s10  ;;  %s272_s25 = int_to_ptr.vmem [resolvable:$true] %s271_s25 }
  0x37   : > { %979 = dma.hbm_to_vmem [thread:$0]  (!%p1398_p11), %s270_s20, 64, %s272_s25, [#allocation9]  }
  0x38   : > { %s301_s15 = sshll.u32 %s292_s14, 4  ;;  %s299_s17 = sshll.u32 %s297_s24, 4  ;;  %s302_s15 = int_to_ptr.vmem [resolvable:$true] %s301_s15  ;;  %s300_s17 = int_to_ptr.hbm [resolvable:$true] %s299_s17 }
  0x39   : > { %s1658_s18 = sand.u32 1, %s1289_s29   ;;  %s1159_s1 = sshra.s32 %s300_s17, 4  ;;  %s1160_s1 = int_to_ptr.hbm [resolvable:$true] %s1159_s1 }
  0x3a   : > { %s289_s21 = scalar_lea.sflag [#allocation3], %s1658_s18  ;;  %s1161_s4 = scalar_lea.hbm %s1160_s1, 8 }
  0x3b   : > { %p1162_p1 = scmp.ne.s32.totalorder %s1160_s1, %s1161_s4  ;;  %s1166_s22 = scalar_lea.hbm %s1624_s0, 16 }
  0x3c   : > { %p1167_p11 = scmp.lt.s32.totalorder %s1160_s1, %s1624_s0  ;;  %p1168_p13 = scmp.lt.s32.totalorder %s1166_s22, %s1161_s4 }
  0x3d   : > { %p1164_p9 = pnand %p1162_p1, %p1103_p12 }
  0x3e   : > { %p1169_p0 = por %p1168_p13, %p1167_p11 }
  0x3f   : > { %p1165_p2 = pneg %p1164_p9 }
  0x41   : > { %p1170_p3 = pnand %p1169_p0, %p1165_p2 }
  0x43   : > { %1173 = shalt.err (!%p1170_p3)
}
  0x44   : > { %983 = dma.hbm_to_vmem [thread:$0]  (!%p1431_p10), %s300_s17, 128, %s302_s15, %s289_s21  }
  0x45   : > { %s337_s24 = scalar_lea.hbm %s1626_s2, %s1425_s26  ;;  %s332_s14 = scalar_lea.vmem [#allocation7], %s1429_s10 }
  0x46   : > { %s341_s18 = sshll.u32 %s332_s14, 4  ;;  %s339_s19 = sshll.u32 %s337_s24, 4  ;;  %s342_s18 = int_to_ptr.vmem [resolvable:$true] %s341_s18  ;;  %s340_s19 = int_to_ptr.hbm [resolvable:$true] %s339_s19 }
  0x47   : > { %s1189_s1 = sshra.s32 %s340_s19, 4  ;;  %s1196_s15 = scalar_lea.hbm %s1626_s2, 16  ;;  %s1190_s1 = int_to_ptr.hbm [resolvable:$true] %s1189_s1 }
  0x48   : > { %s1191_s4 = scalar_lea.hbm %s1190_s1, 8  ;;  %p1197_p2 = scmp.lt.s32.totalorder %s1190_s1, %s1626_s2 }
  0x49   : > { %p1192_p5 = scmp.ne.s32.totalorder %s1190_s1, %s1191_s4  ;;  %p1198_p11 = scmp.lt.s32.totalorder %s1196_s15, %s1191_s4 }
  0x4b   : > { %p1194_p1 = pnand %p1192_p5, %p1103_p12  ;;  %p1199_p13 = por %p1198_p11, %p1197_p2 }
  0x4d   : > { %p1195_p9 = pneg %p1194_p1 }
  0x4f   : > { %p1200_p0 = pnand %p1199_p13, %p1195_p9 }
  0x51   : > { %1203 = shalt.err (!%p1200_p0)
}
  0x52   : > { %989 = dma.hbm_to_vmem [thread:$0]  (!%p1431_p10), %s340_s19, 128, %s342_s18, %s1444_s12  }
  0x53   : > { %350 = sbr.rel (%p1389_p8) target bundleno = 486 (0x1e6), region = 52  ;;  %s1500_s26 = sand.u32 (!%p1389_p8), 1, %s1285_s28  }
  0x54   : > { %s1503_s10 = sshll.u32 (!%p1389_p8), %s1500_s26, 3  ;;  %s353_s23 = scalar_lea.sflag (!%p1389_p8), [#allocation3], %s1500_s26 }
  0x55   : > { %s356_s25 = scalar_lea.vmem (!%p1389_p8), [#allocation2], %s1503_s10 }
  0x58   : > { %1264 = dma.done.wait (%p1376_p4), %s353_s23, 128  }
  0x59   : > { %1266 = vsyncadd (%p1376_p4), %s353_s23, 4294967168  ;;  %s362_s12 = sand.u32 1, %s1367_s9   ;;  %s366_s13 = scalar_lea.vmem [#allocation5], %s1503_s10 }
  0x5a   : > { %s363_s16 = scalar_lea.sflag [#allocation6], %s362_s12 }
  0x5b   : > { %1268 = dma.done.wait (%p1376_p4), %s363_s16, 256  }
  0x5c   : > { %1270 = vsyncadd (%p1376_p4), %s363_s16, 4294967040  ;;  %s376_s27 = scalar_lea.vmem [#allocation7], %s1503_s10  ;;  %p1659_p8 = scmp.eq.s32.totalorder %s1367_s9, 0 }
  0x5e   : > { %1272 = dma.done.wait (%p1659_p8), [#allocation9], 128   ;;  %p1660_p10 = pmov %p1659_p8 }
  0x5f   : > { %v1522_v0 = vld [vmem:[%s356_s25] sm:$0xff]  ;;  %vm437_vm0 = vcmask 1043456   ;;  %v1525_v1 = vld [vmem:[%s366_s13] sm:$0xff]  ;;  %vm472_vm1 = vcmask 27648   ;;  %v1297_v48 = vmov 3   ;;  %v1298_v49 = vmov 1  }
  0x60   : > { %1274 = vsyncadd (%p1660_p10), [#allocation9], 4294967168  ;;  %432 = vst [vmem:[#allocation1] ss:$2 sm:$0xff] %v1522_v0  ;;  %v1530_v7 = vld [vmem:[%s376_s27] sm:$0xff]  ;;  %1041 = vset.pattern.permute.xlu0 %v1297_v48  ;;  %1039 = vset.pattern.permute.xlu2 %v1298_v49  ;;  %v1299_v53 = vmov 0  }
  0x61   : > { %v470_v18 = vld [vmem:[%s1627_s3] sm:$0xf]  ;;  %v480_v25 = vld [vmem:[#allocation8] sm:$0xf]  ;;  %v489_v36 = vld [vmem:[#allocation10] sm:$0xf]  ;;  %1038 = vset.pattern.permute.xlu1 %v1299_v53 }
  0x62   : > { %s956_s1 = sshll.u32 %s1367_s9, 3  ;;  %s429_s17 = scalar_lea.vmem [#allocation11], %s1503_s10 }
  0x63   : > { %s787_s22 = scalar_lea.hbm %s1632_s8, %s956_s1  ;;  %s789_s21 = sshll.u32 %s429_s17, 4  ;;  %s790_s21 = int_to_ptr.vmem [resolvable:$true] %s789_s21 }
  0x64   : > { %s791_s23 = sshll.u32 %s787_s22, 4  ;;  %s776_s9 = scalar_lea.sflag [#allocation4], %s1500_s26  ;;  %s792_s23 = int_to_ptr.hbm [resolvable:$true] %s791_s23 }
  0x65   : > { %s1233_s25 = sshra.s32 %s792_s23, 4  ;;  %s1239_s10 = scalar_lea.hbm %s1632_s8, 16  ;;  %s1234_s25 = int_to_ptr.hbm [resolvable:$true] %s1233_s25 }
  0x66   : > { %s1235_s12 = scalar_lea.hbm %s1234_s25, 8  ;;  %p1240_p5 = scmp.lt.s32.totalorder %s1234_s25, %s1632_s8 }
  0x67   : > { %v433_v2 = vld.sshfl [vmem:[#allocation1] sm:$0xff pattern:$0x75316420]  ;;  %v434_v3 = vld.sshfl [vmem:[#allocation1 + $0x8] sm:$0xff pattern:$0x75316420]  ;;  %p1236_p4 = scmp.ne.s32.totalorder %s1234_s25, %s1235_s12  ;;  %p1241_p1 = scmp.lt.s32.totalorder %s1239_s10, %s1235_s12 }
  0x68   : > { %v438_v4 = vsel %vm437_vm0, %v433_v2, 0.0  ;;  %v439_v5 = vsel %vm437_vm0, %v434_v3, 0.0  ;;  %446 = vst [vmem:[#allocation1] ss:$2 sm:$0xff] %v1525_v1 }
  0x69   : > { %v440_v6 = vadd.f32 %v439_v5, %v438_v4  ;;  %p1237_p12 = pnand %p1236_p4, %p1419_p7  ;;  %p1242_p9 = por %p1241_p1, %p1240_p5 }
  0x6b   : > { %441 = vadd.xlane.f32.xlu0 %v440_v6  ;;  %p1238_p3 = pneg %p1237_p12 }
  0x6d   : > { %p1243_p2 = pnand %p1242_p9, %p1238_p3 }
  0x6f   : > { %v447_v8 = vld.sshfl [vmem:[#allocation1] sm:$0xff pattern:$0x75316420]  ;;  %v448_v9 = vld.sshfl [vmem:[#allocation1 + $0x8] sm:$0xff pattern:$0x75316420] }
  0x70   : > { %v451_v10 = vsel %vm437_vm0, %v447_v8, 0.0  ;;  %v452_v11 = vsel %vm437_vm0, %v448_v9, 0.0  ;;  %459 = vst [vmem:[#allocation1] ss:$2 sm:$0xff] %v1530_v7 }
  0x71   : > { %v453_v12 = vadd.f32 %v452_v11, %v451_v10 }
  0x73   : > { %454 = vadd.xlane.f32.xlu0 %v453_v12 }
  0x77   : > { %v460_v13 = vld.sshfl [vmem:[#allocation1] sm:$0xff pattern:$0x75316420]  ;;  %v461_v14 = vld.sshfl [vmem:[#allocation1 + $0x8] sm:$0xff pattern:$0x75316420] }
  0x78   : > { %v464_v15 = vsel %vm437_vm0, %v460_v13, 0.0  ;;  %v465_v16 = vsel %vm437_vm0, %v461_v14, 0.0 }
  0x79   : > { %v466_v17 = vadd.f32 %v465_v16, %v464_v15 }
  0x7b   : > { %467 = vadd.xlane.f32.xlu1 %v466_v17 }
  0xde   : > { %v442_v19 = vpop.xlane.xlu0 %441 }
  0xdf   : > { %v443_v20 = vmul.f32 0.00390625, %v442_v19 }
  0xe1   : > { %v471_v21 = vmul.f32 %v470_v18, %v443_v20 }
  0xe3   : > { %v473_v22 = vsel %vm472_vm1, %v471_v21, 0.0 }
  0xe4   : > { %v474_v23 = vrot.slane %v473_v22, 4 }
  0xe6   : > { %v475_v24 = vadd.f32 %v474_v23, %v473_v22  ;;  %v455_v26 = vpop.xlane.xlu0 %454 }
  0xe7   : > { %v456_v27 = vmul.f32 0.00390625, %v455_v26 }
  0xe8   : > { %v476_v28 = vrot.slane %v475_v24, 2 }
  0xe9   : > { %v481_v29 = vmul.f32 %v480_v25, %v456_v27 }
  0xea   : > { %v477_v30 = vadd.f32 %v476_v28, %v475_v24 }
  0xeb   : > { %v482_v31 = vsel %vm472_vm1, %v481_v29, 0.0 }
  0xec   : > { %v478_v32 = vrot.slane %v477_v30, 1  ;;  %v483_v33 = vrot.slane %v482_v31, 4 }
  0xee   : > { %v479_v34 = vadd.f32 %v478_v32, %v477_v30  ;;  %v484_v35 = vadd.f32 %v483_v33, %v482_v31  ;;  %v468_v37 = vpop.xlane.xlu1 %467 }
  0xef   : > { %v469_v38 = vmul.f32 0.00390625, %v468_v37 }
  0xf0   : > { %v945_v39 = vmul.f32 -1.442695, %v479_v34  ;;  %v485_v40 = vrot.slane %v484_v35, 2 }
  0xf1   : > { %v490_v41 = vmul.f32 %v489_v36, %v469_v38 }
  0xf2   : > { %1049 = vpow2.f32 %v945_v39  ;;  %v486_v42 = vadd.f32 %v485_v40, %v484_v35 }
  0xf3   : > { %v491_v43 = vsel %vm472_vm1, %v490_v41, 0.0 }
  0xf4   : > { %v487_v44 = vrot.slane %v486_v42, 1  ;;  %v492_v45 = vrot.slane %v491_v43, 4 }
  0xf6   : > { %v488_v46 = vadd.f32 %v487_v44, %v486_v42  ;;  %v493_v47 = vadd.f32 %v492_v45, %v491_v43 }
  0xf8   : > { %v1050_v50 = vpop.eup %1049  ;;  %v946_v51 = vmul.f32 -1.442695, %v488_v46  ;;  %v494_v52 = vrot.slane %v493_v47, 2 }
  0xf9   : > { %v501_v54 = vadd.f32 1.0, %v1050_v50 }
  0xfa   : > { %1051 = vpow2.f32 %v946_v51  ;;  %v495_v55 = vadd.f32 %v494_v52, %v493_v47 }
  0xfb   : > { %1053 = vrcp.f32 %v501_v54  ;;  %v513_v16 = vand.u32 2147483648, %v501_v54  ;;  %vm507_vm6 = vweird.f32 %v501_v54  ;;  %v511_v18 = vand.u32 2147483647, %v501_v54 }
  0xfc   : > { %v496_v56 = vrot.slane %v495_v55, 1 }
  0xfd   : > { %v514_v25 = vor.u32 1.1754944e-38, %v513_v16  ;;  %vm512_vm11 = vcmp.eq.f32.partialorder %v511_v18, 8.507059e+37  ;;  %v649_v18 = vperm.slane %v1525_v1, 0 }
  0xfe   : > { %v497_v57 = vadd.f32 %v496_v56, %v495_v55 }
 0x100   : > { %v1052_v58 = vpop.eup %1051  ;;  %v947_v59 = vmul.f32 -1.442695, %v497_v57 }
 0x101   : > { %v520_v60 = vadd.f32 1.0, %v1052_v58  ;;  %v1054_v61 = vpop.eup %1053  ;;  %v586_v58 = vld [vmem:[%s1630_s6] sm:$0xf] }
 0x102   : > { %1055 = vpow2.f32 %v947_v59  ;;  %v503_v62 = vmul.f32 %v1054_v61, %v501_v54  ;;  %vm508_vm4 = vweird.f32 %v1054_v61 }
 0x103   : > { %1057 = vrcp.f32 %v520_v60  ;;  %v532_v12 = vand.u32 2147483648, %v520_v60  ;;  %v530_v13 = vand.u32 2147483647, %v520_v60  ;;  %vm526_vm3 = vweird.f32 %v520_v60  ;;  %vm509_vm7 = vmor %vm507_vm6, %vm508_vm4 }
 0x104   : > { %v504_v4 = vsub.f32 1.0, %v503_v62 }
 0x105   : > { %vm531_vm8 = vcmp.eq.f32.partialorder %v530_v13, 8.507059e+37  ;;  %v533_v21 = vor.u32 1.1754944e-38, %v532_v12  ;;  %v620_v12 = vperm.slane %v1522_v0, 6 }
 0x106   : > { %v505_v9 = vmul.f32 %v1054_v61, %v504_v4 }
 0x108   : > { %v1056_v63 = vpop.eup %1055  ;;  %v506_v15 = vadd.f32 %v1054_v61, %v505_v9 }
 0x109   : > { %v1058_v2 = vpop.eup %1057  ;;  %v539_v3 = vadd.f32 1.0, %v1056_v63  ;;  %v759_v63 = vld [vmem:[%s1631_s7] sm:$0xf] }
 0x10a   : > { %v522_v5 = vmul.f32 %v1058_v2, %v520_v60  ;;  %vm527_vm2 = vweird.f32 %v1058_v2  ;;  %v510_v24 = vsel %vm509_vm7, %v1054_v61, %v506_v15 }
 0x10b   : > { %1059 = vrcp.f32 %v539_v3  ;;  %vm528_vm5 = vmor %vm526_vm3, %vm527_vm2  ;;  %v551_v20 = vand.u32 2147483648, %v539_v3  ;;  %v549_v23 = vand.u32 2147483647, %v539_v3  ;;  %vm545_vm10 = vweird.f32 %v539_v3 }
 0x10c   : > { %v523_v6 = vsub.f32 1.0, %v522_v5  ;;  %v515_v29 = vsel %vm512_vm11, %v514_v25, %v510_v24  ;;  %v633_v24 = vperm.slane %v1522_v0, 3  ;;  %v634_v25 = vperm.slane %v1522_v0, 7 }
 0x10d   : > { %v552_v28 = vor.u32 1.1754944e-38, %v551_v20  ;;  %vm550_vm13 = vcmp.eq.f32.partialorder %v549_v23, 8.507059e+37  ;;  %v662_v23 = vperm.slane %v1525_v1, 5 }
 0x10e   : > { %v524_v8 = vmul.f32 %v1058_v2, %v523_v6 }
 0x110   : > { %v525_v10 = vadd.f32 %v1058_v2, %v524_v8 }
 0x111   : > { %v1060_v11 = vpop.eup %1059 }
 0x112   : > { %v541_v14 = vmul.f32 %v1060_v11, %v539_v3  ;;  %v529_v19 = vsel %vm528_vm5, %v1058_v2, %v525_v10  ;;  %vm546_vm9 = vweird.f32 %v1060_v11  ;;  %v1300_v2 = vmov 2  }
 0x113   : > { %v534_v26 = vsel %vm531_vm8, %v533_v21, %v529_v19  ;;  %vm547_vm12 = vmor %vm545_vm10, %vm546_vm9  ;;  %v606_v10 = vperm.slane %v1522_v0, 5  ;;  %v650_v19 = vperm.slane %v1525_v1, 4  ;;  %v624_v21 = vperm.slane %v620_v12, 2 }
 0x114   : > { %v542_v17 = vsub.f32 1.0, %v541_v14  ;;  %v555_v31 = vmax.f32 %v515_v29, %v534_v26  ;;  %v594_v14 = vperm.slane %v1522_v0, 4 }
 0x116   : > { %v543_v22 = vmul.f32 %v1060_v11, %v542_v17  ;;  %v610_v17 = vperm.slane %v606_v10, 1 }
 0x118   : > { %v544_v27 = vadd.f32 %v1060_v11, %v543_v22  ;;  %v661_v22 = vperm.slane %v1525_v1, 1 }
 0x11a   : > { %v548_v30 = vsel %vm547_vm12, %v1060_v11, %v544_v27  ;;  %v619_v11 = vperm.slane %v1522_v0, 2  ;;  %v708_v27 = vperm.slane %v1530_v7, 4 }
 0x11b   : > { %v553_v32 = vsel %vm550_vm13, %v552_v28, %v548_v30  ;;  %v675_v30 = vperm.slane %v1525_v1, 2 }
 0x11c   : > { %v556_v33 = vmax.f32 %v555_v31, %v553_v32  ;;  %v623_v20 = vperm.slane %v619_v11, 2  ;;  %v676_v31 = vperm.slane %v1525_v1, 6 }
 0x11e   : > { %v557_v34 = vsub.f32 %v515_v29, %v556_v33  ;;  %v560_v35 = vsub.f32 %v534_v26, %v556_v33  ;;  %v563_v36 = vsub.f32 %v553_v32, %v556_v33  ;;  %v707_v26 = vperm.slane %v1530_v7, 0 }
 0x11f   : > { %v598_v29 = vperm.slane %v594_v14, 0  ;;  %v653_v32 = vperm.slane %v649_v18, 0  ;;  %v654_v33 = vperm.slane %v650_v19, 0 }
 0x120   : > { %v558_v37 = vmul.f32 1.442695, %v557_v34  ;;  %v561_v38 = vmul.f32 1.442695, %v560_v35  ;;  %v564_v39 = vmul.f32 1.442695, %v563_v36 }
 0x121   : > { %v689_v34 = vperm.slane %v1525_v1, 3  ;;  %v690_v35 = vperm.slane %v1525_v1, 7  ;;  %v665_v36 = vperm.slane %v661_v22, 1 }
 0x122   : > { %1061 = vpow2.f32 %v558_v37  ;;  %v666_v37 = vperm.slane %v662_v23, 1 }
 0x123   : > { %1063 = vpow2.f32 %v561_v38  ;;  %v720_v38 = vperm.slane %v1530_v7, 5 }
 0x124   : > { %1065 = vpow2.f32 %v564_v39  ;;  %v637_v39 = vperm.slane %v633_v24, 3 }
 0x128   : > { %v1062_v40 = vpop.eup %1061 }
 0x129   : > { %v1064_v41 = vpop.eup %1063 }
 0x12a   : > { %v566_v42 = vadd.f32 %v1064_v41, %v1062_v40  ;;  %v1066_v43 = vpop.eup %1065 }
 0x12c   : > { %v567_v44 = vadd.f32 %v1066_v43, %v566_v42  ;;  %v712_v42 = vperm.slane %v708_v27, 0 }
 0x12e   : > { %1067 = vrcp.f32 %v567_v44  ;;  %v579_v50 = vand.u32 2147483648, %v567_v44  ;;  %v577_v52 = vand.u32 2147483647, %v567_v44  ;;  %vm573_vm15 = vweird.f32 %v567_v44 }
 0x130   : > { %v580_v55 = vor.u32 1.1754944e-38, %v579_v50  ;;  %vm578_vm2 = vcmp.eq.f32.partialorder %v577_v52, 8.507059e+37  ;;  %v693_v52 = vperm.slane %v689_v34, 3 }
 0x134   : > { %v1068_v45 = vpop.eup %1067 }
 0x135   : > { %v569_v46 = vmul.f32 %v1068_v45, %v567_v44  ;;  %vm574_vm14 = vweird.f32 %v1068_v45 }
 0x136   : > { %vm575_vm1 = vmor %vm573_vm15, %vm574_vm14 }
 0x137   : > { %v570_v47 = vsub.f32 1.0, %v569_v46  ;;  %v680_v46 = vperm.slane %v676_v31, 2 }
 0x139   : > { %v571_v51 = vmul.f32 %v1068_v45, %v570_v47 }
 0x13b   : > { %v572_v54 = vadd.f32 %v1068_v45, %v571_v51 }
 0x13d   : > { %v576_v56 = vsel %vm575_vm1, %v1068_v45, %v572_v54  ;;  %v679_v45 = vperm.slane %v675_v30, 2  ;;  %v694_v54 = vperm.slane %v690_v35, 3 }
 0x13e   : > { %v581_v57 = vsel %vm578_vm2, %v580_v55, %v576_v56 }
 0x13f   : > { %v583_v59 = vmul.f32 %v1062_v40, %v581_v57  ;;  %v585_v61 = vmul.f32 %v1066_v43, %v581_v57  ;;  %v584_v3 = vmul.f32 %v1064_v41, %v581_v57  ;;  %v638_v40 = vperm.slane %v634_v25, 3 }
 0x140   : > { %v711_v41 = vperm.slane %v707_v26, 0 }
 0x141   : > { %v587_v60 = vmul.f32 %v586_v58, %v583_v59  ;;  %v701_v62 = vmul.f32 %v586_v58, %v585_v61  ;;  %v643_v4 = vmul.f32 %v586_v58, %v584_v3  ;;  %v724_v58 = vperm.slane %v720_v38, 1 }
 0x142   : > { %v733_v61 = vperm.slane %v1530_v7, 2 }
 0x143   : > { %630 = vperm.xlu0 %1041, %v587_v60   ;;  %602 = vperm.xlu2 %1039, %v587_v60  }
 0x144   : > { %590 = vperm.xlu1 %1038, %v587_v60  }
 0x14b   : > { %1040 = vset.pattern.permute.xlu2 %v1300_v2  ;;  %1048 = vset.pattern.permute.xlu0 %v1299_v53 }
 0x14c   : > { %704 = vperm.xlu1 %1038, %v701_v62   ;;  %616 = vperm.xlu2 %1040, %v587_v60  }
 0x14d   : > { %762 = vperm.xlu0 %1048, %v759_v63  }
 0x154   : > { %1046 = vset.pattern.permute.xlu1 %v1297_v48  ;;  %1042 = vset.pattern.permute.xlu2 %v1299_v53  ;;  %v605_v53 = vperm.slane %v1522_v0, 1 }
 0x155   : > { %686 = vperm.xlu1 %1046, %v643_v4   ;;  %646 = vperm.xlu2 %1042, %v643_v4  }
 0x156   : > { %v609_v16 = vperm.slane %v605_v53, 1  ;;  %v747_v53 = vperm.slane %v1530_v7, 3 }
 0x15d   : > { %744 = vperm.xlu1 %1046, %v701_v62   ;;  %1043 = vset.pattern.permute.xlu2 %v1298_v49 }
 0x15e   : > { %658 = vperm.xlu2 %1043, %v643_v4  }
 0x166   : > { %1044 = vset.pattern.permute.xlu2 %v1300_v2 }
 0x167   : > { %672 = vperm.xlu2 %1044, %v643_v4  }
 0x16f   : > { %1045 = vset.pattern.permute.xlu2 %v1298_v49  ;;  %v593_v49 = vperm.slane %v1522_v0, 0  ;;  %v719_v0 = vperm.slane %v1530_v7, 1 }
 0x170   : > { %716 = vperm.xlu2 %1045, %v701_v62  }
 0x171   : > { %v597_v28 = vperm.slane %v593_v49, 0  ;;  %v723_v57 = vperm.slane %v719_v0, 1 }
 0x178   : > { %1047 = vset.pattern.permute.xlu2 %v1300_v2 }
 0x179   : > { %730 = vperm.xlu2 %1047, %v701_v62   ;;  %v734_v62 = vperm.slane %v1530_v7, 6 }
 0x17b   : > { %v738_v18 = vperm.slane %v734_v62, 2 }
 0x19d   : > { %v603_v5 = vpop.permute.xlu2 %602 }
 0x19e   : > { %v611_v50 = vmul.f32 %v609_v16, %v603_v5  ;;  %v612_v51 = vmul.f32 %v610_v17, %v603_v5  ;;  %v737_v17 = vperm.slane %v733_v61, 2 }
 0x1a6   : > { %v1557_v6 = vpop.permute.xlu2 %616 }
 0x1a7   : > { %v626_v5 = vmul.f32 %v624_v21, %v1557_v6  ;;  %v751_v21 = vperm.slane %v747_v53, 3 }
 0x1af   : > { %v647_v8 = vpop.permute.xlu2 %646 }
 0x1b0   : > { %v655_v59 = vmul.f32 %v653_v32, %v647_v8  ;;  %v656_v60 = vmul.f32 %v654_v33, %v647_v8 }
 0x1b5   : > { %v631_v49 = vpop.permute.xlu0 %630 }
 0x1b6   : > { %v591_v48 = vpop.permute.xlu1 %590  ;;  %v640_v25 = vmul.f32 %v638_v40, %v631_v49 }
 0x1b7   : > { %v599_v43 = vmul.f32 %v597_v28, %v591_v48  ;;  %v600_v44 = vmul.f32 %v598_v29, %v591_v48  ;;  %v625_v48 = vmul.f32 %v623_v20, %v1557_v6 }
 0x1b8   : > { %v659_v9 = vpop.permute.xlu2 %658 }
 0x1b9   : > { %v667_v55 = vmul.f32 %v665_v36, %v659_v9  ;;  %v668_v56 = vmul.f32 %v666_v37, %v659_v9  ;;  %v613_v63 = vadd.f32 %v611_v50, %v599_v43  ;;  %v614_v2 = vadd.f32 %v612_v51, %v600_v44 }
 0x1ba   : > { %v748_v9 = vperm.slane %v1530_v7, 7  ;;  %v639_v7 = vmul.f32 %v637_v39, %v631_v49 }
 0x1bb   : > { %v669_v10 = vadd.f32 %v667_v55, %v655_v59  ;;  %v670_v11 = vadd.f32 %v668_v56, %v656_v60  ;;  %v627_v19 = vadd.f32 %v625_v48, %v613_v63  ;;  %v628_v22 = vadd.f32 %v626_v5, %v614_v2 }
 0x1bc   : > { %v752_v24 = vperm.slane %v748_v9, 3 }
 0x1bd   : > { %v641_v34 = vadd.f32 %v639_v7, %v627_v19  ;;  %v642_v35 = vadd.f32 %v640_v25, %v628_v22 }
 0x1be   : > { %v1563_v13 = vpop.permute.xlu1 %704 }
 0x1bf   : > { %v713_v20 = vmul.f32 %v711_v41, %v1563_v13  ;;  %v714_v6 = vmul.f32 %v712_v42, %v1563_v13  ;;  %v763_v42 = vpop.permute.xlu0 %762 }
 0x1c1   : > { %v673_v15 = vpop.permute.xlu2 %672 }
 0x1c2   : > { %v681_v3 = vmul.f32 %v679_v45, %v673_v15  ;;  %v682_v4 = vmul.f32 %v680_v46, %v673_v15 }
 0x1c4   : > { %v683_v15 = vadd.f32 %v681_v3, %v669_v10  ;;  %v684_v23 = vadd.f32 %v682_v4, %v670_v11 }
 0x1c7   : > { %v687_v47 = vpop.permute.xlu1 %686 }
 0x1c8   : > { %v695_v12 = vmul.f32 %v693_v52, %v687_v47  ;;  %v696_v8 = vmul.f32 %v694_v54, %v687_v47 }
 0x1ca   : > { %v717_v1 = vpop.permute.xlu2 %716  ;;  %v697_v26 = vadd.f32 %v695_v12, %v683_v15  ;;  %v698_v27 = vadd.f32 %v696_v8, %v684_v23 }
 0x1cb   : > { %v725_v14 = vmul.f32 %v723_v57, %v717_v1  ;;  %v726_v16 = vmul.f32 %v724_v58, %v717_v1 }
 0x1cc   : > { %v699_v38 = vadd.f32 %v697_v26, %v641_v34  ;;  %v700_v41 = vadd.f32 %v698_v27, %v642_v35 }
 0x1cd   : > { %v727_v30 = vadd.f32 %v725_v14, %v713_v20  ;;  %v728_v31 = vadd.f32 %v726_v16, %v714_v6 }
 0x1cf   : > { %v745_v28 = vpop.permute.xlu1 %744 }
 0x1d0   : > { %v753_v36 = vmul.f32 %v751_v21, %v745_v28  ;;  %v754_v37 = vmul.f32 %v752_v24, %v745_v28 }
 0x1d3   : > { %v731_v29 = vpop.permute.xlu2 %730 }
 0x1d4   : > { %v739_v32 = vmul.f32 %v737_v17, %v731_v29  ;;  %v740_v33 = vmul.f32 %v738_v18, %v731_v29 }
 0x1d6   : > { %v741_v0 = vadd.f32 %v739_v32, %v727_v30  ;;  %v742_v13 = vadd.f32 %v740_v33, %v728_v31 }
 0x1d8   : > { %v755_v39 = vadd.f32 %v753_v36, %v741_v0  ;;  %v756_v40 = vadd.f32 %v754_v37, %v742_v13 }
 0x1da   : > { %v757_v43 = vadd.f32 %v755_v39, %v699_v38  ;;  %v758_v44 = vadd.f32 %v756_v40, %v700_v41 }
 0x1dc   : > { %v765_v45 = vadd.f32 %v763_v42, %v757_v43  ;;  %v766_v46 = vadd.f32 %v763_v42, %v758_v44 }
 0x1de   : > { %v768_v47 = vmax.f32 %v766_v46, 0.0  ;;  %v767_v50 = vmax.f32 %v765_v45, 0.0 }
 0x1e0   : > { %v771_v51 = vrot.slane %v768_v47, 4 }
 0x1e2   : > { %v772_v52 = vsel %vm437_vm0, %v767_v50, %v771_v51 }
 0x1e3   : > { %774 = vst [vmem:[%s429_s17] sm:$0xff] %v772_v52 }
 0x1e4   : > { %1246 = shalt.err (!%p1243_p2)
}
 0x1e5   : > { %971 = dma.vmem_to_hbm [thread:$0]  (%p1419_p7), %s790_s21, 128, %s792_s23, %s776_s9  }
 0x1e6 PF: > { %s1662_s26 = sld [smem:[#allocation16_spill]] }
 0x1e7   : > { %s1664_s24 = sld [smem:[#allocation17_spill]] }
 0x1ec   : > { %s803_s14 = sand.u32 1, %s1662_s26  }
 0x1ed   : > { %p1665_p11 = scmp.ge.s32.totalorder %s1664_s24, 2  ;;  %s804_s18 = scalar_lea.sflag [#allocation4], %s803_s14 }
 0x1ef   : > { %p991_p13 = pnand %p1665_p11, %p1381_p6 }
 0x1f1   : > { %p992_p0 = pneg %p991_p13 }
 0x1f3   : > { %1276 = dma.done.wait (%p992_p0), %s804_s18, 128  }
 0x1f4   : > { %1278 = vsyncadd (%p992_p0), %s804_s18, 4294967168  ;;  %s1666_s30 = sld [smem:[#allocation19_spill]]  ;;  %s1668_s27 = smov %s1285_s28 }
 0x1f5   : > { %s1667_s19 = sld [smem:[#allocation20_spill]]  ;;  %s1669_s28 = smov %s1289_s29 }
 0x1fa   : > { %p25_p8 = scmp.ge.s32.totalorder %s1666_s30, 4  }
 0x1fb   : > { %s1670_s29 = smov %s1667_s19 }
 0x1fc   :  { %27 = sbr.rel (!%p25_p8) target bundleno = 11 (0xb), region = 129 }
 0x201   :  { %810 = vsyncpa [#allocation3], 1 }
 0x202   :  { %812 = vsyncpa [#allocation3 + $0x1], 1 }
 0x203   :  { %813 = vsyncpa [#allocation6], 1 }
 0x204   :  { %815 = vsyncpa [#allocation6 + $0x1], 1 }
 0x205   :  { %816 = vsyncpa [#allocation9], 1 }
 0x206   :  { %817 = vsyncpa [#allocation4], 1 }
 0x207   :  { %819 = vsyncpa [#allocation4 + $0x1], 1 }

</bundles_post_ra>
